<compile_context>
chip_gen: v7x
topology: tpu7x:2x2x1
jax: 0.10.0
libtpu: 0.0.40
codegen_flags: <defaults>
</compile_context>

<pallas_src>
import math
from functools import partial

import jax
import jax.numpy as jnp
from jax.experimental import pallas as pl
from jax.experimental.pallas import tpu as pltpu

# ------------------------- config (small, deterministic) -------------------
BATCH = 2
SEQ = 8
HIDDEN = 32
NUM_HEADS = 4
HEAD_DIM = HIDDEN // NUM_HEADS
LN_EPS = 1e-12

HP = 128   # hidden padded to one lane-dense vreg width
DP = 128   # per-head dim padded to lane width


# ------------------------------- Pallas kernel -----------------------------
def bert_attention_kernel(x_ref, mask_ref, wqkv_ref, bqkv_ref, wo_ref,
                          bo_ref, gamma_ref, beta_ref, out_ref, acc_ref,
                          *, hidden, eps):
    """One grid step = one (batch b, head h) pair.

    b = program_id(0) ("parallel"); h = program_id(1) ("arbitrary"): the
    per-head output-projection partials are accumulated in acc_ref and the
    bias + residual + LayerNorm epilogue runs on the last head.
    """
    h = pl.program_id(1)
    nh = pl.num_programs(1)

    x = x_ref[...]                                   # [S, HP] f32 (pad lanes are 0)
    xb = x.astype(jnp.bfloat16)

    # Fused per-head QKV projection: one MXU matmul, N = 3*DP lanes.
    # 1/sqrt(head_dim) is folded into the Q columns of wqkv/bqkv host-side.
    qkv = jnp.dot(xb, wqkv_ref[...],
                  preferred_element_type=jnp.float32) + bqkv_ref[...]   # [S, 3*DP] f32
    dp = wqkv_ref.shape[1] // 3
    q = qkv[:, :dp]                                  # 128-lane-aligned free views
    k = qkv[:, dp:2 * dp]
    v = qkv[:, 2 * dp:]

    # Attention scores for this (b, h); padded head-dim lanes are exact zeros.
    scores = jax.lax.dot_general(
        q.astype(jnp.bfloat16), k.astype(jnp.bfloat16),
        dimension_numbers=(((1,), (1,)), ((), ())),
        preferred_element_type=jnp.float32)          # [S, S]
    scores = scores + mask_ref[...][0]               # additive mask, bcast over q rows

    # Softmax in f32, exact reciprocal (EUP/VPU have slack at this size).
    scores = scores - jnp.max(scores, axis=-1, keepdims=True)
    p = jnp.exp(scores)
    probs = p * pl.reciprocal(jnp.sum(p, axis=-1, keepdims=True))
    # TODO(synk): attention-probs dropout omitted (inference / identity).

    ctx = jnp.dot(probs.astype(jnp.bfloat16), v.astype(jnp.bfloat16),
                  preferred_element_type=jnp.float32)            # [S, DP]

    # Per-head slice of the output projection; summing over heads == full dense.
    partial_out = jnp.dot(ctx.astype(jnp.bfloat16), wo_ref[...],
                          preferred_element_type=jnp.float32)    # [S, HP]

    @pl.when(h == 0)
    def _():
        acc_ref[...] = jnp.zeros_like(acc_ref)
    acc_ref[...] += partial_out

    # Epilogue on the last head: bias + residual + LayerNorm over the real
    # `hidden` features. Padded lanes of y are exact zeros, so plain lane
    # sums divided by `hidden` give the correct moments.
    @pl.when(h == nh - 1)
    def _():
        y = acc_ref[...] + bo_ref[...] + x           # f32, padded lanes stay 0
        inv_h = 1.0 / hidden
        mu = jnp.sum(y, axis=-1, keepdims=True) * inv_h
        ex2 = jnp.sum(y * y, axis=-1, keepdims=True) * inv_h
        var = ex2 - mu * mu
        y_norm = (y - mu) * jax.lax.rsqrt(var + eps)
        out_ref[...] = (y_norm * gamma_ref[...] + beta_ref[...]).astype(out_ref.dtype)
        # TODO(synk): hidden-states dropout omitted (inference / identity).


# --------------------------------- wrapper ----------------------------------
def bert_attention(x, attention_mask, params):
    """x: [B, S, H] float32, attention_mask: [B, S] (1.0 keep / 0.0 mask)."""
    B, S, H = x.shape
    nh, hd = NUM_HEADS, HEAD_DIM
    scale = 1.0 / math.sqrt(hd)

    # ---- host-side lane-dense packing (all zero-padded to 128 lanes) ----
    x2 = jnp.zeros((B * S, HP), jnp.float32).at[:, :H].set(x.reshape(B * S, H))

    # Fused per-head QKV weight [HP, nh*3*DP]; torch Linear is y = x @ W.T + b.
    # Column layout (head-major): [Q_h | K_h | V_h] per head, each DP lanes.
    wq_t, wk_t, wv_t = params["wq"].T * scale, params["wk"].T, params["wv"].T
    w_qkv = jnp.zeros((HP, nh * 3 * DP), jnp.float32)
    b_qkv = jnp.zeros((1, nh * 3 * DP), jnp.float32)
    for hh in range(nh):
        c = slice(hh * hd, (hh + 1) * hd)
        base = hh * 3 * DP
        w_qkv = w_qkv.at[:H, base:base + hd].set(wq_t[:, c])
        w_qkv = w_qkv.at[:H, base + DP:base + DP + hd].set(wk_t[:, c])
        w_qkv = w_qkv.at[:H, base + 2 * DP:base + 2 * DP + hd].set(wv_t[:, c])
        b_qkv = b_qkv.at[0, base:base + hd].set(params["bq"][c] * scale)
        b_qkv = b_qkv.at[0, base + DP:base + DP + hd].set(params["bk"][c])
        b_qkv = b_qkv.at[0, base + 2 * DP:base + 2 * DP + hd].set(params["bv"][c])
    w_qkv = w_qkv.astype(jnp.bfloat16)

    # Per-head output projection [nh*DP, HP]: head h's rows live at h*DP..h*DP+hd.
    wo_t = params["wo"].T
    w_o = jnp.zeros((nh * DP, HP), jnp.float32)
    for hh in range(nh):
        w_o = w_o.at[hh * DP:hh * DP + hd, :H].set(wo_t[hh * hd:(hh + 1) * hd, :])
    w_o = w_o.astype(jnp.bfloat16)

    b_o = jnp.zeros((1, HP), jnp.float32).at[0, :H].set(params["bo"])
    gamma = jnp.zeros((1, HP), jnp.float32).at[0, :H].set(params["gamma"])
    beta = jnp.zeros((1, HP), jnp.float32).at[0, :H].set(params["beta"])

    # Additive attention mask (1-m)*-10000, shape [B, 1, S].
    neg = ((1.0 - attention_mask.astype(jnp.float32)) * (-10000.0)).reshape(B, 1, S)

    kernel = partial(bert_attention_kernel, hidden=H, eps=LN_EPS)

    out2 = pl.pallas_call(
        kernel,
        out_shape=jax.ShapeDtypeStruct((B * S, HP), jnp.float32),
        grid=(B, nh),
        in_specs=[
            pl.BlockSpec((S, HP), lambda b, h: (b, 0)),          # x rows (per batch)
            pl.BlockSpec((1, 1, S), lambda b, h: (b, 0, 0)),     # additive mask
            pl.BlockSpec((HP, 3 * DP), lambda b, h: (0, h)),     # fused per-head Wqkv
            pl.BlockSpec((1, 3 * DP), lambda b, h: (0, h)),      # fused per-head bqkv
            pl.BlockSpec((DP, HP), lambda b, h: (h, 0)),         # per-head Wo slice
            pl.BlockSpec((1, HP), lambda b, h: (0, 0)),          # bo     (resident)
            pl.BlockSpec((1, HP), lambda b, h: (0, 0)),          # gamma  (resident)
            pl.BlockSpec((1, HP), lambda b, h: (0, 0)),          # beta   (resident)
        ],
        out_specs=pl.BlockSpec((S, HP), lambda b, h: (b, 0)),
        scratch_shapes=[pltpu.VMEM((S, HP), jnp.float32)],
        compiler_params=pltpu.CompilerParams(
            dimension_semantics=("parallel", "arbitrary")),
    )(x2, neg, w_qkv, b_qkv, w_o, b_o, gamma, beta)

    return out2[:, :H].reshape(B, S, H)


# ------------------------------ pure-JAX reference ---------------------------
def bert_attention_ref(x, attention_mask, params):
    B, S, H = x.shape
    q = x @ params["wq"].T + params["bq"]
    k = x @ params["wk"].T + params["bk"]
    v = x @ params["wv"].T + params["bv"]

    def split(t):
        return t.reshape(B, S, NUM_HEADS, HEAD_DIM).transpose(0, 2, 1, 3)

    qh, kh, vh = split(q), split(k), split(v)
    scores = jnp.einsum("bhqd,bhkd->bhqk", qh, kh) / math.sqrt(HEAD_DIM)
    ext = (1.0 - attention_mask.astype(x.dtype))[:, None, None, :] * (-10000.0)
    probs = jax.nn.softmax(scores + ext, axis=-1)
    ctx = jnp.einsum("bhqk,bhkd->bhqd", probs, vh)
    ctx = ctx.transpose(0, 2, 1, 3).reshape(B, S, H)

    dense = ctx @ params["wo"].T + params["bo"]
    y = dense + x
    mu = jnp.mean(y, axis=-1, keepdims=True)
    var = jnp.mean((y - mu) ** 2, axis=-1, keepdims=True)
    y_norm = (y - mu) / jnp.sqrt(var + LN_EPS)
    return y_norm * params["gamma"] + params["beta"]


# ----------------------------------- main ------------------------------------
if __name__ == "__main__":
    key = jax.random.PRNGKey(0)
    keys = jax.random.split(key, 12)

    H = HIDDEN
    params = {
        # torch nn.Linear weights are [out_features, in_features]
        "wq": jax.random.normal(keys[0], (H, H), jnp.float32) * 0.02,
        "bq": jax.random.normal(keys[1], (H,), jnp.float32) * 0.02,
        "wk": jax.random.normal(keys[2], (H, H), jnp.float32) * 0.02,
        "bk": jax.random.normal(keys[3], (H,), jnp.float32) * 0.02,
        "wv": jax.random.normal(keys[4], (H, H), jnp.float32) * 0.02,
        "bv": jax.random.normal(keys[5], (H,), jnp.float32) * 0.02,
        "wo": jax.random.normal(keys[6], (H, H), jnp.float32) * 0.02,
        "bo": jax.random.normal(keys[7], (H,), jnp.float32) * 0.02,
        "gamma": jnp.ones((H,), jnp.float32),
        "beta": jnp.zeros((H,), jnp.float32),
    }

    x = jax.random.normal(keys[8], (BATCH, SEQ, HIDDEN), jnp.float32)
    # mask: batch 0 attends everywhere, batch 1 masks the last two positions
    attention_mask = jnp.ones((BATCH, SEQ), jnp.float32)
    attention_mask = attention_mask.at[1, -2:].set(0.0)

    out = bert_attention(x, attention_mask, params)
    out = jax.block_until_ready(out)

    ref = bert_attention_ref(x, attention_mask, params)
    assert out.shape == (BATCH, SEQ, HIDDEN)
    # Softmax reciprocal is exact again; remaining tolerance covers the bf16
    # matmul operands (f32 accumulation). Measured error is ~1e-4 here.
    assert jnp.allclose(out, ref, atol=2e-3, rtol=2e-3), (
        f"max err {jnp.max(jnp.abs(out - ref))}")

    print("KERNEL_OK")
</pallas_src>

<mosaic_0001>
module attributes {stable_mosaic.version = 11 : i64} {
  func.func @bert_attention_kernel(%arg0: i32, %arg1: i32, %arg2: memref<8x128xf32, #tpu.memory_space<vmem>>, %arg3: memref<1x1x8xf32, #tpu.memory_space<vmem>>, %arg4: memref<128x384xbf16, #tpu.memory_space<vmem>>, %arg5: memref<1x384xf32, #tpu.memory_space<vmem>>, %arg6: memref<128x128xbf16, #tpu.memory_space<vmem>>, %arg7: memref<1x128xf32, #tpu.memory_space<vmem>>, %arg8: memref<1x128xf32, #tpu.memory_space<vmem>>, %arg9: memref<1x128xf32, #tpu.memory_space<vmem>>, %arg10: memref<8x128xf32, #tpu.memory_space<vmem>>, %arg11: memref<8x128xf32, #tpu.memory_space<vmem>>) attributes {dimension_semantics = [#tpu.dimension_semantics<parallel>, #tpu.dimension_semantics<arbitrary>], iteration_bounds = array<i64: 2, 4>, scalar_prefetch = 0 : i64, scratch_operands = 1 : i64, tpu.core_type = #tpu.core_type<tc>, window_params = [{transform_indices = @transform_0, window_bounds = array<i64: 8, 128>}, {transform_indices = @transform_1, window_bounds = array<i64: 1, 1, 8>}, {transform_indices = @transform_2, window_bounds = array<i64: 128, 384>}, {transform_indices = @transform_3, window_bounds = array<i64: 1, 384>}, {transform_indices = @transform_4, window_bounds = array<i64: 128, 128>}, {pipeline_mode = #tpu.pipeline_mode<synchronous>, transform_indices = @transform_5, window_bounds = array<i64: 1, 128>}, {pipeline_mode = #tpu.pipeline_mode<synchronous>, transform_indices = @transform_6, window_bounds = array<i64: 1, 128>}, {pipeline_mode = #tpu.pipeline_mode<synchronous>, transform_indices = @transform_7, window_bounds = array<i64: 1, 128>}, {transform_indices = @transform_8, window_bounds = array<i64: 8, 128>}]} {
    %c0 = arith.constant 0 : index
    %c0_0 = arith.constant 0 : index
    %0 = vector.load %arg2[%c0, %c0_0] : memref<8x128xf32, #tpu.memory_space<vmem>>, vector<8x128xf32>
    %1 = arith.truncf %0 : vector<8x128xf32> to vector<8x128xbf16>
    %c0_1 = arith.constant 0 : index
    %c0_2 = arith.constant 0 : index
    %2 = vector.load %arg4[%c0_1, %c0_2] : memref<128x384xbf16, #tpu.memory_space<vmem>>, vector<128x384xbf16>
    %cst = arith.constant dense<0.000000e+00> : vector<8x384xf32>
    %3 = tpu.matmul %1, %2, %cst {dimension_numbers = #tpu.dot_dimension_numbers<[1], [0], [0], [1], [0, 0, 1, 1], [], []>} : vector<8x128xbf16>, vector<128x384xbf16>, vector<8x384xf32> -> vector<8x384xf32>
    %c0_3 = arith.constant 0 : index
    %c0_4 = arith.constant 0 : index
    %4 = vector.load %arg5[%c0_3, %c0_4] : memref<1x384xf32, #tpu.memory_space<vmem>>, vector<1x384xf32>
    %5 = vector.broadcast %4 : vector<1x384xf32> to vector<8x384xf32>
    %6 = arith.addf %3, %5 : vector<8x384xf32>
    %7 = vector.extract_strided_slice %6 {offsets = [0, 0], sizes = [8, 128], strides = [1, 1]} : vector<8x384xf32> to vector<8x128xf32>
    %8 = vector.extract_strided_slice %6 {offsets = [0, 128], sizes = [8, 128], strides = [1, 1]} : vector<8x384xf32> to vector<8x128xf32>
    %9 = vector.extract_strided_slice %6 {offsets = [0, 256], sizes = [8, 128], strides = [1, 1]} : vector<8x384xf32> to vector<8x128xf32>
    %10 = arith.truncf %7 : vector<8x128xf32> to vector<8x128xbf16>
    %11 = arith.truncf %8 : vector<8x128xf32> to vector<8x128xbf16>
    %cst_5 = arith.constant dense<0.000000e+00> : vector<8x8xf32>
    %12 = tpu.matmul %10, %11, %cst_5 {dimension_numbers = #tpu.dot_dimension_numbers<[1], [1], [0], [0], [0, 0, 1, 0], [], []>} : vector<8x128xbf16>, vector<8x128xbf16>, vector<8x8xf32> -> vector<8x8xf32>
    %c0_6 = arith.constant 0 : index
    %c0_7 = arith.constant 0 : index
    %c0_8 = arith.constant 0 : index
    %13 = vector.load %arg3[%c0_6, %c0_7, %c0_8] : memref<1x1x8xf32, #tpu.memory_space<vmem>>, vector<1x1x8xf32>
    %14 = vector.shape_cast %13 : vector<1x1x8xf32> to vector<1x8xf32>
    %15 = vector.broadcast %14 : vector<1x8xf32> to vector<8x8xf32>
    %16 = arith.addf %12, %15 : vector<8x8xf32>
    %cst_9 = arith.constant dense<0xFF800000> : vector<8xf32>
    %17 = vector.multi_reduction <maximumf>, %16, %cst_9 [1] : vector<8x8xf32> to vector<8xf32>
    %18 = vector.shape_cast %17 : vector<8xf32> to vector<8x1xf32>
    %19 = vector.broadcast %18 : vector<8x1xf32> to vector<8x8xf32>
    %20 = arith.subf %16, %19 : vector<8x8xf32>
    %21 = math.exp %20 : vector<8x8xf32>
    %cst_10 = arith.constant dense<0.000000e+00> : vector<8xf32>
    %22 = vector.multi_reduction <add>, %21, %cst_10 [1] : vector<8x8xf32> to vector<8xf32>
    %23 = vector.shape_cast %22 : vector<8xf32> to vector<8x1xf32>
    %24 = tpu.reciprocal %23 : vector<8x1xf32> -> vector<8x1xf32>
    %25 = vector.broadcast %24 : vector<8x1xf32> to vector<8x8xf32>
    %26 = arith.mulf %21, %25 : vector<8x8xf32>
    %27 = arith.truncf %26 : vector<8x8xf32> to vector<8x8xbf16>
    %28 = arith.truncf %9 : vector<8x128xf32> to vector<8x128xbf16>
    %cst_11 = arith.constant dense<0.000000e+00> : vector<8x128xf32>
    %29 = tpu.matmul %27, %28, %cst_11 {dimension_numbers = #tpu.dot_dimension_numbers<[1], [0], [0], [1], [0, 0, 1, 1], [], []>} : vector<8x8xbf16>, vector<8x128xbf16>, vector<8x128xf32> -> vector<8x128xf32>
    %30 = arith.truncf %29 : vector<8x128xf32> to vector<8x128xbf16>
    %c0_12 = arith.constant 0 : index
    %c0_13 = arith.constant 0 : index
    %31 = vector.load %arg6[%c0_12, %c0_13] : memref<128x128xbf16, #tpu.memory_space<vmem>>, vector<128x128xbf16>
    %cst_14 = arith.constant dense<0.000000e+00> : vector<8x128xf32>
    %32 = tpu.matmul %30, %31, %cst_14 {dimension_numbers = #tpu.dot_dimension_numbers<[1], [0], [0], [1], [0, 0, 1, 1], [], []>} : vector<8x128xbf16>, vector<128x128xbf16>, vector<8x128xf32> -> vector<8x128xf32>
    %c0_i32 = arith.constant 0 : i32
    %33 = arith.cmpi eq, %arg1, %c0_i32 : i32
    %34 = arith.extui %33 : i1 to i32
    %c0_i32_15 = arith.constant 0 : i32
    %35 = arith.cmpi ne, %34, %c0_i32_15 : i32
    scf.if %35 {
      %cst_21 = arith.constant 0.000000e+00 : f32
      %42 = vector.broadcast %cst_21 : f32 to vector<8x128xf32>
      %c0_22 = arith.constant 0 : index
      %c0_23 = arith.constant 0 : index
      %43 = vector.load %arg11[%c0_22, %c0_23] : memref<8x128xf32, #tpu.memory_space<vmem>>, vector<8x128xf32>
      tpu.vector_store %arg11[%c0_22, %c0_23], %42 {strides = array<i32>} : memref<8x128xf32, #tpu.memory_space<vmem>>, vector<8x128xf32>,
    } else {
    }
    %c0_16 = arith.constant 0 : index
    %c0_17 = arith.constant 0 : index
    %36 = vector.load %arg11[%c0_16, %c0_17] : memref<8x128xf32, #tpu.memory_space<vmem>>, vector<8x128xf32>
    %37 = arith.addf %36, %32 : vector<8x128xf32>
    %c0_18 = arith.constant 0 : index
    %c0_19 = arith.constant 0 : index
    %38 = vector.load %arg11[%c0_18, %c0_19] : memref<8x128xf32, #tpu.memory_space<vmem>>, vector<8x128xf32>
    tpu.vector_store %arg11[%c0_18, %c0_19], %37 {strides = array<i32>} : memref<8x128xf32, #tpu.memory_space<vmem>>, vector<8x128xf32>,
    %c3_i32 = arith.constant 3 : i32
    %39 = arith.cmpi eq, %arg1, %c3_i32 : i32
    %40 = arith.extui %39 : i1 to i32
    %c0_i32_20 = arith.constant 0 : i32
    %41 = arith.cmpi ne, %40, %c0_i32_20 : i32
    scf.if %41 {
      %c0_21 = arith.constant 0 : index
      %c0_22 = arith.constant 0 : index
      %42 = vector.load %arg11[%c0_21, %c0_22] : memref<8x128xf32, #tpu.memory_space<vmem>>, vector<8x128xf32>
      %c0_23 = arith.constant 0 : index
      %c0_24 = arith.constant 0 : index
      %43 = vector.load %arg7[%c0_23, %c0_24] : memref<1x128xf32, #tpu.memory_space<vmem>>, vector<1x128xf32>
      %44 = vector.broadcast %43 : vector<1x128xf32> to vector<8x128xf32>
      %45 = arith.addf %42, %44 : vector<8x128xf32>
      %46 = arith.addf %45, %0 : vector<8x128xf32>
      %cst_25 = arith.constant dense<0.000000e+00> : vector<8xf32>
      %47 = vector.multi_reduction <add>, %46, %cst_25 [1] : vector<8x128xf32> to vector<8xf32>
      %48 = vector.shape_cast %47 : vector<8xf32> to vector<8x1xf32>
      %cst_26 = arith.constant 3.125000e-02 : f32
      %49 = vector.broadcast %cst_26 : f32 to vector<8x1xf32>
      %50 = arith.mulf %48, %49 : vector<8x1xf32>
      %51 = arith.mulf %46, %46 : vector<8x128xf32>
      %cst_27 = arith.constant dense<0.000000e+00> : vector<8xf32>
      %52 = vector.multi_reduction <add>, %51, %cst_27 [1] : vector<8x128xf32> to vector<8xf32>
      %53 = vector.shape_cast %52 : vector<8xf32> to vector<8x1xf32>
      %cst_28 = arith.constant 3.125000e-02 : f32
      %54 = vector.broadcast %cst_28 : f32 to vector<8x1xf32>
      %55 = arith.mulf %53, %54 : vector<8x1xf32>
      %56 = arith.mulf %50, %50 : vector<8x1xf32>
      %57 = arith.subf %55, %56 : vector<8x1xf32>
      %58 = vector.broadcast %50 : vector<8x1xf32> to vector<8x128xf32>
      %59 = arith.subf %46, %58 : vector<8x128xf32>
      %cst_29 = arith.constant 9.99999996E-13 : f32
      %60 = vector.broadcast %cst_29 : f32 to vector<8x1xf32>
      %61 = arith.addf %57, %60 : vector<8x1xf32>
      %62 = math.rsqrt %61 : vector<8x1xf32>
      %63 = vector.broadcast %62 : vector<8x1xf32> to vector<8x128xf32>
      %64 = arith.mulf %59, %63 : vector<8x128xf32>
      %c0_30 = arith.constant 0 : index
      %c0_31 = arith.constant 0 : index
      %65 = vector.load %arg8[%c0_30, %c0_31] : memref<1x128xf32, #tpu.memory_space<vmem>>, vector<1x128xf32>
      %66 = vector.broadcast %65 : vector<1x128xf32> to vector<8x128xf32>
      %67 = arith.mulf %64, %66 : vector<8x128xf32>
      %c0_32 = arith.constant 0 : index
      %c0_33 = arith.constant 0 : index
      %68 = vector.load %arg9[%c0_32, %c0_33] : memref<1x128xf32, #tpu.memory_space<vmem>>, vector<1x128xf32>
      %69 = vector.broadcast %68 : vector<1x128xf32> to vector<8x128xf32>
      %70 = arith.addf %67, %69 : vector<8x128xf32>
      %c0_34 = arith.constant 0 : index
      %c0_35 = arith.constant 0 : index
      %71 = vector.load %arg10[%c0_34, %c0_35] : memref<8x128xf32, #tpu.memory_space<vmem>>, vector<8x128xf32>
      tpu.vector_store %arg10[%c0_34, %c0_35], %70 {strides = array<i32>} : memref<8x128xf32, #tpu.memory_space<vmem>>, vector<8x128xf32>,
    } else {
    }
    return
  }
  func.func @transform_0(%arg0: i32, %arg1: i32) -> (i32, i32) {
    %c0_i32 = arith.constant 0 : i32
    %c0_i32_0 = arith.constant 0 : i32
    return %arg0, %c0_i32 : i32, i32
  }
  func.func @transform_1(%arg0: i32, %arg1: i32) -> (i32, i32, i32) {
    %c0_i32 = arith.constant 0 : i32
    %c0_i32_0 = arith.constant 0 : i32
    %c0_i32_1 = arith.constant 0 : i32
    return %arg0, %c0_i32, %c0_i32_0 : i32, i32, i32
  }
  func.func @transform_2(%arg0: i32, %arg1: i32) -> (i32, i32) {
    %c0_i32 = arith.constant 0 : i32
    %c0_i32_0 = arith.constant 0 : i32
    return %c0_i32, %arg1 : i32, i32
  }
  func.func @transform_3(%arg0: i32, %arg1: i32) -> (i32, i32) {
    %c0_i32 = arith.constant 0 : i32
    %c0_i32_0 = arith.constant 0 : i32
    return %c0_i32, %arg1 : i32, i32
  }
  func.func @transform_4(%arg0: i32, %arg1: i32) -> (i32, i32) {
    %c0_i32 = arith.constant 0 : i32
    %c0_i32_0 = arith.constant 0 : i32
    return %arg1, %c0_i32 : i32, i32
  }
  func.func @transform_5(%arg0: i32, %arg1: i32) -> (i32, i32) {
    %c0_i32 = arith.constant 0 : i32
    %c0_i32_0 = arith.constant 0 : i32
    %c0_i32_1 = arith.constant 0 : i32
    return %c0_i32, %c0_i32_0 : i32, i32
  }
  func.func @transform_6(%arg0: i32, %arg1: i32) -> (i32, i32) {
    %c0_i32 = arith.constant 0 : i32
    %c0_i32_0 = arith.constant 0 : i32
    %c0_i32_1 = arith.constant 0 : i32
    return %c0_i32, %c0_i32_0 : i32, i32
  }
  func.func @transform_7(%arg0: i32, %arg1: i32) -> (i32, i32) {
    %c0_i32 = arith.constant 0 : i32
    %c0_i32_0 = arith.constant 0 : i32
    %c0_i32_1 = arith.constant 0 : i32
    return %c0_i32, %c0_i32_0 : i32, i32
  }
  func.func @transform_8(%arg0: i32, %arg1: i32) -> (i32, i32) {
    %c0_i32 = arith.constant 0 : i32
    %c0_i32_0 = arith.constant 0 : i32
    return %arg0, %c0_i32 : i32, i32
  }
}

</mosaic_0001>

<bundles_post_ra>
// kernel: tpu_custom_call.1
= control target key start
LH: loop header
LB: loop body
LE: loop exit
PB: predicated region body
PF: predicated region fallthrough
CT: control target
= control target key end

     0   :  { %s2245_s0 = inlined_call_operand.hbm [shape: f32[16,128], index: 0, kind: input, shape index: {}]   ;;  %s2246_s1 = inlined_call_operand.vmem [shape: f32[2,1,8], index: 1, kind: input, shape index: {}]   ;;  %s2247_s2 = inlined_call_operand.hbm [shape: bf16[128,1536], index: 2, kind: input, shape index: {}]   ;;  %s2248_s3 = inlined_call_operand.hbm [shape: f32[1,1536], index: 3, kind: input, shape index: {}]   ;;  %s2249_s4 = inlined_call_operand.hbm [shape: bf16[512,128], index: 4, kind: input, shape index: {}]   ;;  %s2250_s5 = inlined_call_operand.vmem [shape: f32[1,128], index: 5, kind: input, shape index: {}]   ;;  %s2251_s6 = inlined_call_operand.vmem [shape: f32[1,128], index: 6, kind: input, shape index: {}]   ;;  %s2252_s7 = inlined_call_operand.vmem [shape: f32[1,128], index: 7, kind: input, shape index: {}]   ;;  %s2253_s8 = inlined_call_operand.hbm [shape: f32[16,128], index: 8, kind: output, shape index: {}]  }
   0x1   :  { %2271 = sst [smem:[#allocation26_spill]] %s2245_s0 }
   0x2   :  { %2272 = sst [smem:[#allocation27_spill]] %s2246_s1 }
   0x3   :  { %2273 = sst [smem:[#allocation28_spill]] %s2247_s2 }
   0x4   :  { %2274 = sst [smem:[#allocation29_spill]] %s2250_s5 }
   0x5   :  { %2275 = sst [smem:[#allocation30_spill]] %s2251_s6 }
   0x6   :  { %2276 = sst [smem:[#allocation31_spill]] %s2252_s7 }
   0x7   :  { %2277 = sst [smem:[#allocation32_spill]] %s2253_s8 }
   0x8   :  { %13 = vsyncpa [#allocation4], 0 }
   0x9   :  { %15 = vsyncpa [#allocation4 + $0x1], 0 }
   0xa   :  { %16 = vsyncpa [#allocation7], 0 }
   0xb   :  { %18 = vsyncpa [#allocation7 + $0x1], 0 }
   0xc   :  { %19 = vsyncpa [#allocation10], 0 }
   0xd   :  { %21 = vsyncpa [#allocation10 + $0x1], 0 }
   0xe   :  { %22 = vsyncpa [#allocation5], 0 }
   0xf   :  { %24 = vsyncpa [#allocation5 + $0x1], 0  ;;  %s1785_s27 = smov 0   ;;  %s1787_s28 = smov 0  }
  0x10   :  { %s1789_s29 = smov 0   ;;  %s1791_s30 = smov 0  }
  0x11   :  { %s1793_s9 = smov 0   ;;  %s1795_s10 = smov 0  }
  0x12   :  { %s1797_s11 = smov 0   ;;  %s1799_s12 = smov 0  }
  0x13   :  { %s1801_s13 = smov 0   ;;  %s1803_s14 = smov 0  }
  0x14   :  { %s1805_s15 = smov 0  }
  0x15 LB: > { %2278 = sst [smem:[#allocation16_spill]] %s1692_s29  ;;  %p2256_p0 = scmp.eq.s32.totalorder %s1724_s15, 0  ;;  %s1724_s15 = sphi %s1805_s15, %s30_s15   ;;  %s1720_s14 = sphi %s1803_s14, %s2325_s14   ;;  %s1716_s13 = sphi %s1801_s13, %s2332_s13   ;;  %s1712_s12 = sphi %s1799_s12, %s2323_s12   ;;  %s1708_s11 = sphi %s1797_s11, %s2331_s11   ;;  %s1704_s10 = sphi %s1795_s10, %s2322_s10   ;;  %s1700_s9 = sphi %s1793_s9, %s2330_s9   ;;  %s1696_s30 = sphi %s1791_s30, %s2329_s30   ;;  %s1692_s29 = sphi %s1789_s29, %s2328_s29   ;;  %s1688_s28 = sphi %s1787_s28, %s2327_s28   ;;  %s1684_s27 = sphi %s1785_s27, %s2326_s27  }
  0x16   : > { %2279 = sst [smem:[#allocation17_spill]] %s1704_s10  ;;  %p108_p1 = scmp.ne.s32.totalorder %s1692_s29, %s1688_s28 }
  0x17   : > { %2280 = sst [smem:[#allocation18_spill]] %s1708_s11  ;;  %p2255_p2 = scmp.lt.s32.totalorder %s1724_s15, 8 }
  0x18   : > { %2281 = sst [smem:[#allocation19_spill]] %s1712_s12  ;;  %s312_s17 = sand.u32 1, %s1724_s15  }
  0x19   : > { %2282 = sst [smem:[#allocation20_spill]] %s1720_s14  ;;  %p110_p3 = por %p108_p1, %p2256_p0 }
  0x1a   : > { %s1849_s18 = sand.u32 1, %s1692_s29   ;;  %s1221_s19 = smul.u32 192, %s1716_s13 }
  0x1b   : > { %s1298_s20 = smul.u32 192, %s1849_s18  ;;  %p1855_p4 = pnand %p2255_p2, %p110_p3 }
  0x1c   : > { %s2284_s2 = sld [smem:[#allocation28_spill]]  ;;  %s1866_s16 = scalar_lea.sflag [#allocation7], %s312_s17 }
  0x1d   : > { %s2283_s21 = scalar_select %p1855_p4, 1, 0 }
  0x1e   : > { %s316_s25 = scalar_lea.vmem [#allocation6], %s1298_s20  ;;  %p1872_p6 = pneg %p1855_p4 }
  0x1f   : > { %s323_s26 = sshll.u32 %s316_s25, 4  ;;  %s1864_s26 = int_to_ptr.vmem [resolvable:$true] %s323_s26 }
  0x22   : > { %s1862_s24 = scalar_lea.hbm %s2284_s2, %s1221_s19  ;;  %s1479_s20 = scalar_lea.hbm %s2284_s2, 12288 }
  0x23   : > { %s1474_s8 = scalar_lea.hbm %s1862_s24, 3072  ;;  %p1480_p9 = scmp.lt.u32.totalorder %s1862_s24, %s2284_s2 }
  0x24   : > { %p1475_p5 = scmp.ne.s32.totalorder %s1862_s24, %s1474_s8  ;;  %p1481_p10 = scmp.lt.u32.totalorder %s1479_s20, %s1474_s8 }
  0x25   : > { %p1483_p12 = scmp.lt.u32.totalorder %s1474_s8, %s1862_s24 }
  0x26   : > { %p1477_p7 = pnand %p1872_p6, %p1475_p5  ;;  %p1482_p11 = por %p1481_p10, %p1480_p9 }
  0x28   : > { %p1478_p8 = pneg %p1477_p7  ;;  %p1484_p13 = por %p1483_p12, %p1482_p11 }
  0x2a   : > { %p1485_p1 = pnand %p1484_p13, %p1478_p8 }
  0x2c   : > { %1488 = shalt.err (!%p1485_p1)
}
  0x2d   : > { %s1489_s17 = scalar_lea.vmem %s1864_s26, 3072  ;;  %s1726_s19 = smov [#allocation6]  }
  0x2e   : > { %p1490_p3 = scmp.ne.s32.totalorder %s1864_s26, %s1489_s17  ;;  %s1494_s22 = sshll.u32 %s1726_s19, 4  ;;  %s1495_s22 = int_to_ptr.vmem [resolvable:$false] %s1494_s22 }
  0x2f   : > { %s1496_s23 = scalar_lea.vmem %s1495_s22, 6144  ;;  %p1497_p2 = scmp.lt.s32.totalorder %s1864_s26, %s1495_s22 }
  0x30   : > { %p1492_p5 = pnand %p1490_p3, %p1872_p6  ;;  %p1498_p0 = scmp.lt.s32.totalorder %s1496_s23, %s1489_s17 }
  0x32   : > { %p1493_p7 = pneg %p1492_p5  ;;  %p1499_p9 = por %p1498_p0, %p1497_p2 }
  0x34   : > { %p1500_p10 = pnand %p1499_p9, %p1493_p7 }
  0x36   : > { %1503 = shalt.err (!%p1500_p10)
}
  0x37   : > { %s1727_s8 = smov 768   ;;  %s1728_s20 = smov 192  }
  0x38   : > { %s1729_s25 = smov 12   ;;  %p1174_p0 = scmp.ge.s32.totalorder %s1724_s15, 1 }
  0x39   : > { %1318 = dma.hbm_to_vmem [thread:$0]  (!%p1855_p4), %s1862_s24, 3072, %s1864_s26, %s1866_s16, %s1727_s8, %s1728_s20, %s1729_s25  }
  0x3a   : > { %p371_p2 = scmp.lt.s32.totalorder %s1724_s15, 9  ;;  %s1903_s19 = sadd.s32 4294967295, %s1724_s15  }
  0x3b   : > { %s1164_s22 = sadd.s32 4294967294, %s1724_s15   ;;  %s39_s23 = sadd.s32 1, %s1716_s13 }
  0x3c   : > { %p1898_p8 = pnand %p1174_p0, %p371_p2  ;;  %p40_p11 = scmp.ge.s32.totalorder %s39_s23, 4 }
  0x3d   : > { %s42_s2 = sadd.s32 1, %s1720_s14  ;;  %s49_s24 = sadd.s32 1, %s1704_s10 }
  0x3e   : > { %s2286_s17 = scalar_select %p1898_p8, 1, 0 }
  0x3f   : > { %p56_p12 = scmp.ne.s32.totalorder %s1704_s10, %s1700_s9  ;;  %s2334_s23 = smov (%p40_p11, %s39_s23), 0 }
  0x40   : > { %2287 = sst [smem:[#allocation21_spill]] %s2334_s23  ;;  %s2336_s2 = smov (!%p40_p11, %s42_s2), %s1720_s14 }
  0x41   : > { %p2288_p13 = scmp.eq.s32.totalorder %s1724_s15, 0  ;;  %p2258_p3 = scmp.ne.s32.totalorder %s1700_s9, %s1696_s30 }
  0x42   : > { %p44_p5 = scmp.ge.s32.totalorder %s2336_s2, 2  ;;  %p63_p7 = scmp.eq.s32.totalorder %s1903_s19, 0 }
  0x43   : > { %p1919_p1 = por %p2288_p13, %p56_p12  ;;  %s98_s8 = ssub.s32 %s1716_s13, %s2334_s23 }
  0x44   : > { %p114_p9 = scmp.ne.s32.totalorder %s1688_s28, %s1684_s27  ;;  %s2338_s2 = smov (%p44_p5, %s2336_s2), 0 }
  0x45   : > { %2290 = sst [smem:[#allocation22_spill]] %s2338_s2  ;;  %p1935_p10 = por %p63_p7, %p2258_p3 }
  0x46   : > { %p99_p0 = scmp.eq.s32.totalorder %s98_s8, 0  ;;  %s46_s25 = ssub.s32 %s1720_s14, %s2338_s2 }
  0x47   : > { %s2291_s20 = scalar_select %p1935_p10, 1, 0 }
  0x48   : > { %p1941_p2 = por %p114_p9, %p63_p7  ;;  %p47_p11 = scmp.eq.s32.totalorder %s46_s25, 0 }
  0x49   : > { %p253_p13 = scmp.eq.s32.totalorder %s1903_s19, 7  ;;  %s2294_s27 = sadd.s32 1, %s1692_s29 }
  0x4a   : > { %s2292_s6 = scalar_select %p1941_p2, 1, 0 }
  0x4b   : > { %s1949_s23 = scalar_select %p99_p0, %s1692_s29, %s2294_s27  }
  0x4c   : > { %2293 = sst [smem:[#allocation23_spill]] %s2292_s6  ;;  %p1957_p5 = por %p253_p13, %p56_p12 }
  0x4d   : > { %2295 = sst [smem:[#allocation24_spill]] %s1949_s23  ;;  %p259_p3 = scmp.eq.s32.totalorder %s1164_s22, 7 }
  0x4e   : > { %s1952_s5 = scalar_select %p47_p11, %s1704_s10, %s49_s24  }
  0x4f   : > { %s2297_s11 = scalar_select %p1957_p5, 1, 0 }
  0x50   : > { %2296 = sst [smem:[#allocation25_spill]] %s1952_s5  ;;  %s288_s8 = sand.u32 1, %s1704_s10  }
  0x51   : > { %s1168_s2 = sshll.u32 %s1720_s14, 7  ;;  %p2298_p10 = scmp.ne.s32.totalorder %s1700_s9, %s1696_s30 }
  0x52   : > { %s1167_s25 = sshll.u32 %s288_s8, 3  ;;  %s2300_s0 = sld [smem:[#allocation26_spill]] }
  0x53   : > { %p1966_p7 = por %p259_p3, %p2298_p10  ;;  %p2301_p9 = scmp.lt.s32.totalorder %s1724_s15, 8 }
  0x54   : > { %s292_s24 = scalar_lea.vmem [#allocation3], %s1167_s25  ;;  %s1299_s5 = smul.u32 3, %s1849_s18 }
  0x55   : > { %s2299_s1 = scalar_select %p1966_p7, 1, 0 }
  0x56   : > { %p1979_p12 = pnand %p2301_p9, %p1919_p1  ;;  %s299_s14 = sshll.u32 %s292_s24, 4  ;;  %s1984_s14 = int_to_ptr.vmem [resolvable:$true] %s299_s14 }
  0x57   : > { %s289_s6 = scalar_lea.sflag [#allocation4], %s288_s8 }
  0x58   : > { %s1973_s27 = scalar_lea.hbm %s2300_s0, %s1168_s2  ;;  %p1506_p10 = pneg %p1979_p12 }
  0x59   : > { %s1504_s2 = scalar_lea.hbm %s1973_s27, 128  ;;  %s1509_s10 = scalar_lea.hbm %s2300_s0, 256 }
  0x5a   : > { %p1505_p3 = scmp.ne.s32.totalorder %s1973_s27, %s1504_s2  ;;  %p1510_p1 = scmp.lt.u32.totalorder %s1973_s27, %s2300_s0 }
  0x5b   : > { %p1511_p13 = scmp.lt.u32.totalorder %s1509_s10, %s1504_s2  ;;  %p1513_p7 = scmp.lt.u32.totalorder %s1504_s2, %s1973_s27 }
  0x5c   : > { %p1507_p0 = pnand %p1506_p10, %p1505_p3 }
  0x5d   : > { %p1512_p9 = por %p1511_p13, %p1510_p1 }
  0x5e   : > { %p1508_p11 = pneg %p1507_p0 }
  0x5f   : > { %p1514_p5 = por %p1513_p7, %p1512_p9 }
  0x61   : > { %p1515_p2 = pnand %p1514_p5, %p1508_p11 }
  0x63   : > { %1518 = shalt.err (!%p1515_p2)
}
  0x64   : > { %s1519_s8 = scalar_lea.vmem %s1984_s14, 128  ;;  %s1730_s25 = smov [#allocation3]  }
  0x65   : > { %p1520_p3 = scmp.ne.s32.totalorder %s1984_s14, %s1519_s8  ;;  %s1524_s24 = sshll.u32 %s1730_s25, 4  ;;  %s1525_s24 = int_to_ptr.vmem [resolvable:$false] %s1524_s24 }
  0x66   : > { %s1526_s29 = scalar_lea.vmem %s1525_s24, 256  ;;  %p1527_p4 = scmp.lt.s32.totalorder %s1984_s14, %s1525_s24 }
  0x67   : > { %p1522_p0 = pnand %p1520_p3, %p1506_p10  ;;  %p1528_p1 = scmp.lt.s32.totalorder %s1526_s29, %s1519_s8 }
  0x69   : > { %p1523_p8 = pneg %p1522_p0  ;;  %p1529_p13 = por %p1528_p1, %p1527_p4 }
  0x6b   : > { %p1530_p7 = pnand %p1529_p13, %p1523_p8 }
  0x6d   : > { %1533 = shalt.err (!%p1530_p7)
}
  0x6e   : > { %1315 = dma.hbm_to_vmem [thread:$0]  (!%p1979_p12), %s1973_s27, 128, %s1984_s14, %s289_s6  }
  0x6f   : > { %s1222_s10 = smul.u32 48, %s1716_s13  ;;  %s337_s23 = scalar_lea.vmem [#allocation8], %s1299_s5 }
  0x70   : > { %s345_s2 = sshll.u32 %s337_s23, 4  ;;  %s1539_s29 = scalar_lea.hbm %s2248_s3, 192  ;;  %s346_s2 = int_to_ptr.vmem [resolvable:$true] %s345_s2 }
  0x71   : > { %s343_s25 = scalar_lea.hbm %s2248_s3, %s1222_s10 }
  0x72   : > { %s1534_s8 = scalar_lea.hbm %s343_s25, 48  ;;  %p1540_p5 = scmp.lt.u32.totalorder %s343_s25, %s2248_s3 }
  0x73   : > { %p1535_p4 = scmp.ne.s32.totalorder %s343_s25, %s1534_s8  ;;  %p1541_p12 = scmp.lt.u32.totalorder %s1539_s29, %s1534_s8 }
  0x74   : > { %p1543_p11 = scmp.lt.u32.totalorder %s1534_s8, %s343_s25 }
  0x75   : > { %p1537_p8 = pnand %p1535_p4, %p1872_p6  ;;  %p1542_p10 = por %p1541_p12, %p1540_p5 }
  0x77   : > { %p1538_p2 = pneg %p1537_p8  ;;  %p1544_p9 = por %p1543_p11, %p1542_p10 }
  0x79   : > { %p1545_p3 = pnand %p1544_p9, %p1538_p2 }
  0x7b   : > { %1548 = shalt.err (!%p1545_p3)
}
  0x7c   : > { %s1549_s5 = scalar_lea.vmem %s346_s2, 48  ;;  %s1731_s27 = smov [#allocation8]  }
  0x7d   : > { %p1550_p0 = scmp.ne.s32.totalorder %s346_s2, %s1549_s5  ;;  %s1554_s6 = sshll.u32 %s1731_s27, 4  ;;  %s1555_s6 = int_to_ptr.vmem [resolvable:$false] %s1554_s6 }
  0x7e   : > { %s1556_s10 = scalar_lea.vmem %s1555_s6, 96  ;;  %p1557_p7 = scmp.lt.s32.totalorder %s346_s2, %s1555_s6 }
  0x7f   : > { %p1552_p1 = pnand %p1550_p0, %p1872_p6  ;;  %p1558_p4 = scmp.lt.s32.totalorder %s1556_s10, %s1549_s5 }
  0x81   : > { %p1553_p13 = pneg %p1552_p1  ;;  %p1559_p8 = por %p1558_p4, %p1557_p7 }
  0x83   : > { %p1560_p5 = pnand %p1559_p8, %p1553_p13 }
  0x85   : > { %1563 = shalt.err (!%p1560_p5)
}
  0x86   : > { %p2303_p12 = scmp.ne.s32.totalorder %s2283_s21, 0  ;;  %s1171_s0 = sshll.u32 %s1849_s18, 6 }
  0x87   : > { %s1223_s23 = sshll.u32 %s1716_s13, 10  ;;  %s356_s22 = scalar_lea.vmem [#allocation9], %s1171_s0 }
  0x88   : > { %1321 = dma.hbm_to_vmem [thread:$0]  (!%p2303_p12), %s343_s25, 48, %s346_s2, %s1866_s16  }
  0x89   : > { %s2035_s8 = scalar_lea.hbm %s2249_s4, %s1223_s23  ;;  %s363_s24 = sshll.u32 %s356_s22, 4  ;;  %s2037_s24 = int_to_ptr.vmem [resolvable:$true] %s363_s24 }
  0x8a   : > { %s353_s29 = scalar_lea.sflag [#allocation10], %s1849_s18  ;;  %s1564_s14 = scalar_lea.hbm %s2035_s8, 1024 }
  0x8b   : > { %p1565_p2 = scmp.ne.s32.totalorder %s2035_s8, %s1564_s14  ;;  %s1569_s25 = scalar_lea.hbm %s2249_s4, 4096 }
  0x8c   : > { %p1570_p9 = scmp.lt.u32.totalorder %s2035_s8, %s2249_s4  ;;  %p1571_p3 = scmp.lt.u32.totalorder %s1569_s25, %s1564_s14 }
  0x8d   : > { %p1567_p10 = pnand %p1565_p2, %p1872_p6  ;;  %p1573_p1 = scmp.lt.u32.totalorder %s1564_s14, %s2035_s8 }
  0x8e   : > { %p1572_p0 = por %p1571_p3, %p1570_p9 }
  0x8f   : > { %p1568_p11 = pneg %p1567_p10 }
  0x90   : > { %p1574_p13 = por %p1573_p1, %p1572_p0 }
  0x92   : > { %p1575_p7 = pnand %p1574_p13, %p1568_p11 }
  0x94   : > { %1578 = shalt.err (!%p1575_p7)
}
  0x95   : > { %s1579_s6 = scalar_lea.vmem %s2037_s24, 1024  ;;  %s1732_s10 = smov [#allocation9]  }
  0x96   : > { %p1580_p4 = scmp.ne.s32.totalorder %s2037_s24, %s1579_s6  ;;  %s1584_s0 = sshll.u32 %s1732_s10, 4  ;;  %s1585_s0 = int_to_ptr.vmem [resolvable:$false] %s1584_s0 }
  0x97   : > { %s1586_s23 = scalar_lea.vmem %s1585_s0, 2048  ;;  %p1587_p2 = scmp.lt.s32.totalorder %s2037_s24, %s1585_s0 }
  0x98   : > { %p1582_p8 = pnand %p1580_p4, %p1872_p6  ;;  %p1588_p10 = scmp.lt.s32.totalorder %s1586_s23, %s1579_s6 }
  0x9a   : > { %p1583_p5 = pneg %p1582_p8  ;;  %p1589_p9 = por %p1588_p10, %p1587_p2 }
  0x9c   : > { %p1590_p3 = pnand %p1589_p9, %p1583_p5 }
  0x9e   : > { %1593 = shalt.err (!%p1590_p3)
}
  0x9f   : > { %s1733_s12 = smov 64   ;;  %s1734_s26 = smov 4  }
  0xa0   : > { %1324 = dma.hbm_to_vmem [thread:$0]  (!%p2303_p12), %s2035_s8, 1024, %s2037_s24, %s353_s29, %s1733_s12, %s1733_s12, %s1734_s26  }
  0xa1   : > { %p2304_p6 = scmp.ne.s32.totalorder %s2286_s17, 0 }
  0xa2   : > { %s2066_s7 = sand.u32 (!%p2304_p6), 1, %s1700_s9   ;;  %p2305_p11 = scmp.ne.s32.totalorder (!%p2304_p6), %s2291_s20, 0 }
  0xa3   : > { %375 = sbr.rel (%p2304_p6) target bundleno = 1616 (0x650), region = 52  ;;  %s1175_s22 = sshll.u32 (!%p2304_p6), %s2066_s7, 3 }
  0xa4   : > { %s378_s14 = scalar_lea.sflag (!%p2304_p6), [#allocation4], %s2066_s7  ;;  %s2072_s16 = scalar_lea.vmem (!%p2304_p6), [#allocation3], %s1175_s22 }
  0xaa   : > { %1667 = dma.done.wait (%p2305_p11), %s378_s14, 128  }
  0xab   : > { %1669 = vsyncadd (%p2305_p11), %s378_s14, 4294967168  ;;  %s2306_s18 = sld [smem:[#allocation23_spill]]  ;;  %s386_s21 = sand.u32 1, %s1903_s19  }
  0xac   : > { %s388_s17 = sand.u32 1, %s1688_s28   ;;  %s387_s24 = scalar_lea.sflag [#allocation7], %s386_s21 }
  0xad   : > { %s1300_s8 = smul.u32 192, %s388_s17 }
  0xaf   : > { %s2080_s29 = scalar_lea.vmem [#allocation6], %s1300_s8 }
  0xb1   : > { %p2307_p12 = scmp.ne.s32.totalorder %s2306_s18, 0 }
  0xb3   : > { %1671 = dma.done.wait (%p2307_p12), %s387_s24, 3120  }
  0xb4   : > { %1673 = vsyncadd (%p2307_p12), %s387_s24, 4294964176  ;;  %s1301_s2 = smul.u32 3, %s388_s17  ;;  %s1176_s25 = sshll.u32 %s388_s17, 6 }
  0xb5   : > { %s405_s20 = scalar_lea.sflag [#allocation10], %s388_s17  ;;  %s2088_s27 = scalar_lea.vmem [#allocation9], %s1176_s25 }
  0xb6   : > { %s2086_s5 = scalar_lea.vmem [#allocation8], %s1301_s2 }
  0xb7   : > { %1675 = dma.done.wait (%p2307_p12), %s405_s20, 1024  }
  0xb8   : > { %1677 = vsyncadd (%p2307_p12), %s405_s20, 4294966272  ;;  %v1735_v0 = vmov 0   ;;  %v1736_v1 = vmov 0.0   ;;  %v1428_v2 = vld [vmem:[%s2080_s29 + $0x4] ss:$12 sps:$4 sm:$0xff]   ;;  %vm1737_vm0 = vmmov 0   ;;  %v502_v28 = vlaneseq }
  0xb9   : > { %677 = vmatprep.mubr.bf16.mxu0 %v1735_v0  ;;  %1246 = vmatprep.subr.bf16.mxu1 %v1736_v1  ;;  %v1430_v3 = vld [vmem:[%s2080_s29] ss:$12 sps:$4 sm:$0xff]   ;;  %v1431_v4 = vld [vmem:[%s2080_s29 + $0x1c] ss:$12 sps:$4 sm:$0xff]   ;;  %v1433_v5 = vld [vmem:[%s2080_s29 + $0x18] ss:$12 sps:$4 sm:$0xff]  }
  0xba   : > { %645 = vmatprep.subr.bf16.mxu0 %v1428_v2  ;;  %v1434_v6 = vld [vmem:[%s2080_s29 + $0x34] ss:$12 sps:$4 sm:$0xff]   ;;  %v1436_v7 = vld [vmem:[%s2080_s29 + $0x30] ss:$12 sps:$4 sm:$0xff]   ;;  %v1437_v8 = vld [vmem:[%s2080_s29 + $0x4c] ss:$12 sps:$4 sm:$0xff]   ;;  %1262 = vmatprep.mubr.msk.bf16.mxu1 %vm1737_vm0, %v1736_v1 }
  0xbb   : > { %646 = vmatpush1.bf16.msra.mxu0 %v1430_v3  ;;  %v1439_v9 = vld [vmem:[%s2080_s29 + $0x48] ss:$12 sps:$4 sm:$0xff]   ;;  %v1440_v11 = vld [vmem:[%s2080_s29 + $0x64] ss:$12 sps:$4 sm:$0xff]   ;;  %v1453_v12 = vld [vmem:[%s2080_s29 + $0x20] ss:$12 sps:$4 sm:$0xff]  }
  0xbc   : > { %647 = vmatprep.subr.bf16.mxu0 %v1431_v4  ;;  %v1452_v10 = vld [vmem:[%s2080_s29 + $0x8] ss:$12 sps:$4 sm:$0xff]   ;;  %v1442_v13 = vld [vmem:[%s2080_s29 + $0x60] ss:$12 sps:$4 sm:$0xff]   ;;  %v1445_v15 = vld [vmem:[%s2080_s29 + $0x78] ss:$12 sps:$4 sm:$0xff]  }
  0xbd   : > { %1247 = vmatpush3.bf16.msra.mxu1 %v1452_v10  ;;  %v1443_v14 = vld [vmem:[%s2080_s29 + $0x7c] ss:$12 sps:$4 sm:$0xff]   ;;  %v1454_v16 = vld [vmem:[%s2080_s29 + $0x38] ss:$12 sps:$4 sm:$0xff]   ;;  %v1446_v17 = vld [vmem:[%s2080_s29 + $0x94] ss:$12 sps:$4 sm:$0xff]  }
  0xbe   : > { %1248 = vmatprep.subr.bf16.mxu1 %v1736_v1  ;;  %v1455_v18 = vld [vmem:[%s2080_s29 + $0x50] ss:$12 sps:$4 sm:$0xff]   ;;  %v1449_v20 = vld [vmem:[%s2080_s29 + $0xac] ss:$12 sps:$4 sm:$0xff]   ;;  %v1456_v21 = vld [vmem:[%s2080_s29 + $0x68] ss:$12 sps:$4 sm:$0xff]  }
  0xbf   : > { %648 = vmatpush1.bf16.msra.mxu0 %v1433_v5  ;;  %v1448_v19 = vld [vmem:[%s2080_s29 + $0x90] ss:$12 sps:$4 sm:$0xff]   ;;  %v1451_v22 = vld [vmem:[%s2080_s29 + $0xa8] ss:$12 sps:$4 sm:$0xff]   ;;  %v1457_v24 = vld [vmem:[%s2080_s29 + $0x80] ss:$12 sps:$4 sm:$0xff]  }
  0xc0   : > { %649 = vmatprep.subr.bf16.mxu0 %v1434_v6  ;;  %v2121_v23 = vld [vmem:[%s2072_s16] sm:$0xff]  ;;  %v503_v29 = vshrl.u32 %v502_v28, 7  ;;  %v500_v31 = vld [vmem:[%s2086_s5] sm:$0x7]  ;;  %s2308_s19 = sld [smem:[#allocation19_spill]]  ;;  %vm792_vm1 = vcmask 1043456  }
  0xc1   : > { %1249 = vmatpush3.bf16.msra.mxu1 %v1453_v12  ;;  %v467_v25 = vpack.c.bf16 %v2121_v23, %v2121_v23  ;;  %v1458_v26 = vld [vmem:[%s2080_s29 + $0x98] ss:$12 sps:$4 sm:$0xff]   ;;  %v1459_v27 = vld [vmem:[%s2080_s29 + $0xb0] ss:$12 sps:$4 sm:$0xff]   ;;  %s2309_s0 = sld [smem:[#allocation27_spill]]  ;;  %vm775_vm2 = vcmask 64512  }
  0xc2   : > { %1250 = vmatprep.subr.bf16.mxu1 %v1736_v1  ;;  %v508_v30 = vsub.s32 1, %v503_v29  ;;  %v504_v33 = vsub.s32 0, %v503_v29  ;;  %v512_v43 = vsub.s32 2, %v503_v29  ;;  %v1460_v0 = vld [vmem:[%s2088_s27] sm:$0xff]   ;;  %v1461_v2 = vld [vmem:[%s2088_s27 + $0x8] sm:$0xff]   ;;  %v1462_v3 = vld [vmem:[%s2088_s27 + $0x10] sm:$0xff]  }
  0xc3   : > { %650 = vmatpush1.bf16.msra.mxu0 %v1436_v7  ;;  %v1463_v4 = vld [vmem:[%s2088_s27 + $0x18] sm:$0xff]   ;;  %v1464_v5 = vld [vmem:[%s2088_s27 + $0x20] sm:$0xff]   ;;  %v1465_v6 = vld [vmem:[%s2088_s27 + $0x28] sm:$0xff]   ;;  %s2168_s12 = scalar_lea.vmem [#allocation11], %s1175_s22  ;;  %s2310_s26 = sld [smem:[#allocation18_spill]] }
  0xc4   : > { %651 = vmatprep.subr.bf16.mxu0 %v1437_v8  ;;  %v509_v32 = vrot.slane %v500_v31, %v508_v30  ;;  %v505_v38 = vrot.slane %v500_v31, %v504_v33  ;;  %v513_v44 = vrot.slane %v500_v31, %v512_v43  ;;  %v1466_v7 = vld [vmem:[%s2088_s27 + $0x30] sm:$0xff]   ;;  %v1467_v12 = vld [vmem:[%s2088_s27 + $0x38] sm:$0xff]  }
  0xc5   : > { %1251 = vmatpush3.bf16.msra.mxu1 %v1454_v16 }
  0xc6   : > { %1252 = vmatprep.subr.bf16.mxu1 %v1736_v1  ;;  %p459_p0 = scmp.lt.s32.totalorder %s2308_s19, 1 }
  0xc7   : > { %652 = vmatpush1.bf16.msra.mxu0 %v1439_v9 }
  0xc8   : > { %653 = vmatprep.subr.bf16.mxu0 %v1440_v11  ;;  %s2340_s19 = smov (!%p459_p0, %s2308_s19), 1 }
  0xc9   : > { %1253 = vmatpush3.bf16.msra.mxu1 %v1455_v18  ;;  %s461_s23 = scalar_lea.vmem %s2309_s0, %s2340_s19  ;;  %p1212_p1 = scmp.ne.s32.totalorder %s2310_s26, 0 }
  0xca   : > { %1254 = vmatprep.subr.bf16.mxu1 %v1736_v1  ;;  %v1202_v52 = vld [vmem:[%s461_s23] ss:$0 sm:$0xff] }
  0xcb   : > { %654 = vmatpush1.bf16.msra.mxu0 %v1442_v13 }
  0xcc   : > { %655 = vmatprep.subr.bf16.mxu0 %v1443_v14 }
  0xcd   : > { %1255 = vmatpush3.bf16.msra.mxu1 %v1456_v21  ;;  %v1738_v21 = vmov (!%p1212_p1), 0.0  }
  0xce   : > { %1256 = vmatprep.subr.bf16.mxu1 %v1736_v1  ;;  %945 = vst [vmem:[#allocation2] sm:$0xff] (!%p1212_p1), %v1738_v21 }
  0xcf   : > { %656 = vmatpush1.bf16.msra.mxu0 %v1445_v15 }
  0xd0   : > { %657 = vmatprep.subr.bf16.mxu0 %v1446_v17 }
  0xd1   : > { %1257 = vmatpush3.bf16.msra.mxu1 %v1457_v24 }
  0xd2   : > { %1258 = vmatprep.subr.bf16.mxu1 %v1736_v1 }
  0xd3   : > { %658 = vmatpush1.bf16.msra.mxu0 %v1448_v19 }
  0xd4   : > { %659 = vmatprep.subr.bf16.mxu0 %v1449_v20 }
  0xd5   : > { %1259 = vmatpush3.bf16.msra.mxu1 %v1458_v26 }
  0xd6   : > { %1260 = vmatprep.subr.bf16.mxu1 %v1736_v1 }
  0xd7   : > { %660 = vmatpush1.bf16.msra.mxu0 %v1451_v22 }
  0xd8   : > { %1278 = vmatprep.subr.bf16.mxu0 %v1736_v1 }
  0xd9   : > { %1261 = vmatpush3.bf16.msra.mxu1 %v1459_v27 }
  0xda   : > { %678 = vmatmul.mubr.bf16.vlgmr.msra.gmra.mrb[0].mxu0 %v467_v25  ;;  %1266 = vmatprep.subr.bf16.mxu1 %v1736_v1 }
  0xdb   : > { %1294 = vmatprep.mubr.msk.bf16.mxu0 %vm1737_vm0, %v1736_v1  ;;  %1279 = vmatpush3.bf16.msra.mxu0 %v1460_v0 }
  0xdc   : > { %1263 = vmatmul.mubr.bf16.vlgmr.msra.gmra.mrb[0].mxu1 %v467_v25  ;;  %1280 = vmatprep.subr.bf16.mxu0 %v1736_v1 }
  0xdd   : > { %1268 = vmatprep.mubr.msk.bf16.mxu1 %vm1737_vm0, %v1736_v1 }
  0xdf   : > { %1281 = vmatpush3.bf16.msra.mxu0 %v1461_v2 }
  0xe0   : > { %1282 = vmatprep.subr.bf16.mxu0 %v1736_v1 }
  0xe3   : > { %1283 = vmatpush3.bf16.msra.mxu0 %v1462_v3 }
  0xe4   : > { %1284 = vmatprep.subr.bf16.mxu0 %v1736_v1 }
  0xe7   : > { %1285 = vmatpush3.bf16.msra.mxu0 %v1463_v4 }
  0xe8   : > { %1286 = vmatprep.subr.bf16.mxu0 %v1736_v1 }
  0xeb   : > { %1287 = vmatpush3.bf16.msra.mxu0 %v1464_v5 }
  0xec   : > { %1288 = vmatprep.subr.bf16.mxu0 %v1736_v1 }
  0xef   : > { %1289 = vmatpush3.bf16.msra.mxu0 %v1465_v6 }
  0xf0   : > { %1290 = vmatprep.subr.bf16.mxu0 %v1736_v1 }
  0xf3   : > { %1291 = vmatpush3.bf16.msra.mxu0 %v1466_v7 }
  0xf4   : > { %1292 = vmatprep.subr.bf16.mxu0 %v1736_v1 }
  0xf7   : > { %1293 = vmatpush3.bf16.msra.mxu0 %v1467_v12 }
 0x1ad   : > { %v679_v34 = vpop.f32.mrb[0].mxu0 }
 0x1ae   : > { %v681_v35 = vpop.f32.mrb[1].mxu0  ;;  %v680_v41 = vadd.f32 %v679_v34, %v505_v38 }
 0x1af   : > { %v682_v36 = vadd.f32 %v681_v35, %v509_v32  ;;  %v683_v37 = vpop.f32.mrb[2].mxu0  ;;  %v720_v45 = vpop.f32.mrb[0].mxu1 }
 0x1b0   : > { %v684_v39 = vpop.f32.mrb[3].mxu0  ;;  %v726_v42 = vpack.c.bf16 %v680_v41, %v680_v41  ;;  %v721_v46 = vadd.f32 %v720_v45, %v513_v44  ;;  %v1264_v47 = vpop.f32.mrb[1].mxu1 }
 0x1b1   : > { %v727_v40 = vpack.c.bf16 %v682_v36, %v682_v36  ;;  %v723_v48 = vpop.f32.mrb[2].mxu1 }
 0x1b2   : > { %v788_v49 = vpack.c.bf16 %v721_v46, %v721_v46  ;;  %v1265_v50 = vpop.f32.mrb[3].mxu1 }
 0x1b3   : > { %1267 = vmatpush3.bf16.xpose.msra.mxu1 %v727_v40 }
 0x1b4   : > { %1272 = vmatprep.subr.bf16.mxu1 %v1736_v1  ;;  %v794_v51 = vsel %vm792_vm1, %v788_v49, 0 }
 0x1ba   : > { %1269 = vmatmul.mubr.bf16.vlgmr.msra.gmra.mrb[4].mxu1 %v726_v42 }
 0x1bb   : > { %1274 = vmatprep.mubr.msk.bf16.mxu1 %vm1737_vm0, %v1736_v1  ;;  %1273 = vmatpush3.bf16.msra.mxu1 %v794_v51 }
 0x28d   : > { %v769_v53 = vpop.f32.mrb[4].mxu1 }
 0x28e   : > { %v770_v54 = vadd.f32 %v1202_v52, %v769_v53  ;;  %v1270_v55 = vpop.f32.mrb[5].mxu1 }
 0x28f   : > { %v772_v56 = vpop.f32.mrb[6].mxu1 }
 0x290   : > { %v1271_v57 = vpop.f32.mrb[7].mxu1  ;;  %v776_v58 = vsel %vm775_vm2, %v770_v54, -inf }
 0x291   : > { %777 = vmax.xlane.f32.xlu0 %v776_v58 }
 0x31e   : > { %v778_v59 = vpop.xlane.xlu0 %777 }
 0x31f   : > { %v779_v60 = vsub.f32 %v770_v54, %v778_v59 }
 0x321   : > { %v780_v61 = vmul.f32 1.442695, %v779_v60 }
 0x323   : > { %1468 = vpow2.f32 %v780_v61 }
 0x32d   : > { %v1469_v62 = vpop.eup %1468 }
 0x32e   : > { %v782_v63 = vsel %vm775_vm2, %v1469_v62, 0.0 }
 0x32f   : > { %783 = vadd.xlane.f32.xlu0 %v782_v63 }
 0x3bc   : > { %v784_v8 = vpop.xlane.xlu0 %783 }
 0x3bd   : > { %1470 = vrcp.f32 %v784_v8 }
 0x3c7   : > { %v1471_v9 = vpop.eup %1470 }
 0x3c8   : > { %v786_v10 = vmul.f32 %v1471_v9, %v1469_v62 }
 0x3ca   : > { %v787_v11 = vpack.c.bf16 %v786_v10, %v786_v10 }
 0x3cc   : > { %1275 = vmatmul.mubr.msk.bf16.vlgmr.msra.gmra.mrb[8].mxu1 %vm775_vm2, %v787_v11 }
 0x49f   : > { %v830_v13 = vpop.f32.mrb[8].mxu1 }
 0x4a0   : > { %v836_v14 = vpack.c.bf16 %v830_v13, %v830_v13  ;;  %v1276_v15 = vpop.f32.mrb[9].mxu1 }
 0x4a1   : > { %v833_v16 = vpop.f32.mrb[10].mxu1 }
 0x4a2   : > { %v1277_v17 = vpop.f32.mrb[11].mxu1  ;;  %1295 = vmatmul.mubr.bf16.vlgmr.msra.gmra.mrb[4].mxu0 %v836_v14 }
 0x572   : > { %944 = sbr.rel (%p1212_p1) target bundleno = 1401 (0x579), region = 72 }
 0x575   : > { %v935_v18 = vpop.f32.mrb[4].mxu0 }
 0x576   : > { %v1296_v19 = vpop.f32.mrb[5].mxu0 }
 0x577   : > { %v938_v20 = vpop.f32.mrb[6].mxu0 }
 0x578   : > { %v1297_v1 = vpop.f32.mrb[7].mxu0 }
 0x579 PF: > { %v946_v22 = vld [vmem:[#allocation2] sm:$0xff]  ;;  %s2311_s14 = sld [smem:[#allocation18_spill]] }
 0x57a   : > { %v947_v24 = vadd.f32 %v946_v22, %v935_v18 }
 0x57c   : > { %948 = vst [vmem:[#allocation2] sm:$0xff] %v947_v24 }
 0x57f   : > { %p1213_p13 = scmp.ne.s32.totalorder %s2311_s14, 3 }
 0x580   : > { %s2312_s21 = sld [smem:[#allocation29_spill]] (!%p1213_p13)  ;;  %s2313_s8 = sld [smem:[#allocation30_spill]] (!%p1213_p13) }
 0x581   : > { %952 = sbr.rel (%p1213_p13) target bundleno = 1589 (0x635), region = 76  ;;  %s2314_s2 = sld [smem:[#allocation31_spill]] (!%p1213_p13) }
 0x583   : > { %v953_v25 = vld [vmem:[#allocation2] sm:$0xff] (!%p1213_p13) }
 0x586   : > { %v1214_v26 = vld [vmem:[%s2312_s21] ss:$0 sm:$0xff] (!%p1213_p13) }
 0x587   : > { %v961_v27 = vadd.f32 (!%p1213_p13), %v1214_v26, %v953_v25  ;;  %v1215_v39 = vld [vmem:[%s2313_s8] ss:$0 sm:$0xff] (!%p1213_p13) }
 0x589   : > { %v962_v28 = vadd.f32 %v961_v27, %v2121_v23  ;;  %v1216_v23 = vld [vmem:[%s2314_s2] ss:$0 sm:$0xff] }
 0x58b   : > { %963 = vadd.xlane.f32.xlu0 %v962_v28  ;;  %v966_v29 = vmul.f32 %v962_v28, %v962_v28 }
 0x58f   : > { %967 = vadd.xlane.f32.xlu0 %v966_v29 }
 0x618   : > { %v964_v30 = vpop.xlane.xlu0 %963 }
 0x619   : > { %v965_v31 = vmul.f32 0.03125, %v964_v30 }
 0x61b   : > { %v970_v33 = vmul.f32 %v965_v31, %v965_v31  ;;  %v972_v37 = vsub.f32 %v962_v28, %v965_v31 }
 0x61c   : > { %v968_v32 = vpop.xlane.xlu0 %967 }
 0x61d   : > { %v969_v34 = vmul.f32 0.03125, %v968_v32 }
 0x61f   : > { %v971_v35 = vsub.f32 %v969_v34, %v970_v33 }
 0x621   : > { %v973_v36 = vadd.f32 1e-12, %v971_v35 }
 0x623   : > { %1472 = vrsqrt.f32 %v973_v36 }
 0x62d   : > { %v1473_v38 = vpop.eup %1472 }
 0x62e   : > { %v975_v40 = vmul.f32 %v1473_v38, %v972_v37 }
 0x630   : > { %v983_v41 = vmul.f32 %v1215_v39, %v975_v40 }
 0x632   : > { %v991_v42 = vadd.f32 %v1216_v23, %v983_v41 }
 0x634   : > { %992 = vst [vmem:[%s2168_s12] sm:$0xff] %v991_v42 }
 0x635 PF: > { %s2315_s25 = sld [smem:[#allocation19_spill]]  ;;  %s2316_s19 = sld [smem:[#allocation32_spill]] }
 0x636   : > { %s1007_s10 = sshll.u32 %s2168_s12, 4  ;;  %s994_s0 = scalar_lea.sflag [#allocation5], %s2066_s7  ;;  %s1008_s10 = int_to_ptr.vmem [resolvable:$true] %s1007_s10 }
 0x637   : > { %s1594_s23 = scalar_lea.vmem %s1008_s10, 128  ;;  %p2317_p4 = scmp.ne.s32.totalorder %s2297_s11, 0 }
 0x638   : > { %p1595_p7 = scmp.ne.s32.totalorder %s1008_s10, %s1594_s23  ;;  %s1739_s26 = smov [#allocation11]  }
 0x639   : > { %s1598_s14 = sshll.u32 %s1739_s26, 4  ;;  %s1599_s14 = int_to_ptr.vmem [resolvable:$false] %s1598_s14 }
 0x63a   : > { %p1596_p8 = pnand %p1595_p7, %p2317_p4  ;;  %s1600_s16 = scalar_lea.vmem %s1599_s14, 256 }
 0x63b   : > { %s1218_s5 = sshll.u32 %s2315_s25, 7  ;;  %p1601_p2 = scmp.lt.s32.totalorder %s1008_s10, %s1599_s14 }
 0x63c   : > { %s2187_s6 = scalar_lea.hbm %s2316_s19, %s1218_s5  ;;  %p1597_p5 = pneg %p1596_p8 }
 0x63d   : > { %p1602_p10 = scmp.lt.s32.totalorder %s1600_s16, %s1594_s23 }
 0x63f   : > { %p1603_p9 = por %p1602_p10, %p1601_p2 }
 0x641   : > { %p1604_p3 = pnand %p1603_p9, %p1597_p5 }
 0x643   : > { %1607 = shalt.err (!%p1604_p3)
}
 0x644   : > { %s1608_s7 = scalar_lea.hbm %s2187_s6, 128  ;;  %s1612_s21 = scalar_lea.hbm %s2316_s19, 256 }
 0x645   : > { %p1609_p6 = scmp.ne.s32.totalorder %s2187_s6, %s1608_s7  ;;  %p1613_p0 = scmp.lt.u32.totalorder %s2187_s6, %s2316_s19 }
 0x646   : > { %p1614_p1 = scmp.lt.u32.totalorder %s1612_s21, %s1608_s7  ;;  %p1616_p7 = scmp.lt.u32.totalorder %s1608_s7, %s2187_s6 }
 0x647   : > { %p1610_p11 = pnand %p1609_p6, %p2317_p4 }
 0x648   : > { %p1615_p13 = por %p1614_p1, %p1613_p0 }
 0x649   : > { %p1611_p12 = pneg %p1610_p11 }
 0x64a   : > { %p1617_p8 = por %p1616_p7, %p1615_p13 }
 0x64c   : > { %p1618_p5 = pnand %p1617_p8, %p1611_p12 }
 0x64e   : > { %1621 = shalt.err (!%p1618_p5)
}
 0x64f   : > { %1310 = dma.vmem_to_hbm [thread:$0]  (%p2317_p4), %s1008_s10, 128, %s2187_s6, %s994_s0  }
 0x650 PF: > { %p1330_p2 = scmp.ge.s32.totalorder %s1724_s15, 2  ;;  %s1019_s8 = sand.u32 1, %s1696_s30  }
 0x651   : > { %p2318_p10 = scmp.ne.s32.totalorder %s2299_s1, 0  ;;  %s1020_s24 = scalar_lea.sflag [#allocation5], %s1019_s8 }
 0x653   : > { %p1326_p9 = pnand %p1330_p2, %p2318_p10 }
 0x655   : > { %1679 = dma.done.wait (!%p1326_p9), %s1020_s24, 128  }
 0x656   : > { %1681 = vsyncadd (!%p1326_p9), %s1020_s24, 4294967168  ;;  %s30_s15 = sadd.s32 1, %s1724_s15   ;;  %s2319_s29 = sld [smem:[#allocation16_spill]] }
 0x657   : > { %p27_p3 = scmp.ge.s32.totalorder %s30_s15, 10   ;;  %s2320_s2 = sld [smem:[#allocation24_spill]] }
 0x658   : > { %s2321_s11 = sld [smem:[#allocation17_spill]]  ;;  %s2322_s10 = sld [smem:[#allocation25_spill]] }
 0x659   : > { %s2323_s12 = sld [smem:[#allocation20_spill]]  ;;  %s2324_s25 = sld [smem:[#allocation21_spill]] }
 0x65a   : > { %s2325_s14 = sld [smem:[#allocation22_spill]]  ;;  %s2326_s27 = smov %s1688_s28 }
 0x65b   : > { %s2329_s30 = smov %s1700_s9  ;;  %29 = sbr.rel (!%p27_p3) target bundleno = 21 (0x15), region = 145 }
 0x65c   : > { %s2327_s28 = smov %s2319_s29 }
 0x65d   : > { %s2328_s29 = smov %s2320_s2 }
 0x65e   : > { %s2330_s9 = smov %s2321_s11  ;;  %s2331_s11 = smov %s1716_s13 }
 0x65f   : > { %s2332_s13 = smov %s2324_s25 }
 0x662   :  { %1025 = vsyncpa [#allocation4], 1 }
 0x663   :  { %1027 = vsyncpa [#allocation4 + $0x1], 1 }
 0x664   :  { %1028 = vsyncpa [#allocation7], 1 }
 0x665   :  { %1030 = vsyncpa [#allocation7 + $0x1], 1 }
 0x666   :  { %1031 = vsyncpa [#allocation10], 1 }
 0x667   :  { %1033 = vsyncpa [#allocation10 + $0x1], 1 }
 0x668   :  { %1034 = vsyncpa [#allocation5], 1 }
 0x669   :  { %1036 = vsyncpa [#allocation5 + $0x1], 1 }

</bundles_post_ra>
